<compile_context>
chip_gen: v7x
topology: tpu7x:2x2x1
jax: 0.10.0
libtpu: 0.0.40
codegen_flags: <defaults>
</compile_context>

<pallas_src>
import math

import jax
import jax.numpy as jnp
from jax.experimental import pallas as pl
from jax.experimental.pallas import tpu as pltpu

_MIB = 1 << 20


def _round_up(v, m):
    return ((v + m - 1) // m) * m


def _round_down(v, m):
    return (v // m) * m


def _attention_kernel(x_ref, w_ref, b_ref, o_ref):
    """x_ref/o_ref: (Nb, C, Lb) VMEM; w_ref: (C, 1) f32 VMEM; b_ref: (1, 1) f32 SMEM."""
    x = x_ref[...]                                   # native dtype, (Nb, C, Lb)
    w = w_ref[...]                                   # (C, 1) f32

    # nn.Linear(in_features, 1) along the channel (sublane) axis, f32 accumulate:
    #   logits[n, l] = sum_c w[c] * x[n, c, l] + bias
    logits = jnp.sum(x.astype(jnp.float32) * w[None, :, :],
                     axis=1, keepdims=True) + b_ref[0, 0]        # (Nb, 1, Lb)

    # F.softmax(..., dim=2) over a size-1 axis: 1 for finite logits, NaN for
    # +/-Inf or NaN logits.  (z - z) + 1 has identical finite/Inf/NaN semantics
    # and avoids an EUP exp and a divide per logits vreg.
    weights = (logits - logits) + jnp.float32(1.0)               # (Nb, 1, Lb)

    # weights repeated over channels, times the untransposed input (native dtype,
    # so no full-block f32 temporary on the store path).
    o_ref[...] = weights.astype(o_ref.dtype) * x


def attention_forward(x, w, b, *, trans_me=True, footprint_bytes=16 * _MIB):
    """x: (B, in_features, L) when trans_me=True.  Returns (B, in_features, L)."""
    if not trans_me:
        # TODO(synk): the trans_me=False branch of the reference only broadcasts
        # correctly for square inputs; only the default trans_me=True layout is
        # implemented here.
        raise NotImplementedError("only trans_me=True is supported")

    B, C, L = x.shape
    w_col = jnp.asarray(w, jnp.float32).reshape(C, 1)   # torch Linear.weight is (1, C)
    b_sc = jnp.asarray(b, jnp.float32).reshape(1, 1)

    # ---- block sizing (explicit VMEM footprint budget) ----------------------
    itemsize = jnp.dtype(x.dtype).itemsize
    sublane_mult = 8 * max(1, 4 // itemsize)             # 8 (f32) / 16 (bf16) / 32 (i8)
    padded_c = _round_up(C, sublane_mult)                # sublane padding in VMEM tiles
    padded_c32 = _round_up(C, 8)                         # padding of f32 reduction temp
    # TODO(synk): for C < sublane_mult, folding (B, C) into a single sublane axis
    # would remove the padding waste; not implemented (budget accounts for it).

    # Bytes per (batch, lane) element of one block: in + out double-buffered (4x),
    # the f32 product temp of the logits reduction, and small logits/weights rows.
    per_nl = 4 * padded_c * itemsize + 4 * padded_c32 + 64

    lane_budget = max(128, footprint_bytes // per_nl)    # max n_blk * l_blk
    if L <= lane_budget:
        l_blk = L                                        # full L per block (always legal)
    else:
        l_blk = min(max(128, _round_down(lane_budget, 128)),
                    _round_down(L, 128))                 # 128-multiple, ragged tail ok
    n_blk = max(1, min(B, lane_budget // l_blk))

    # Guarantee >= 2 grid steps on a "parallel" axis so both v7x TensorCores run.
    if pl.cdiv(B, n_blk) * pl.cdiv(L, l_blk) < 2:
        if B >= 2:
            n_blk = (B + 1) // 2
        elif L >= 256:
            l_blk = max(128, _round_down((L + 1) // 2, 128))

    grid = (pl.cdiv(B, n_blk), pl.cdiv(L, l_blk))

    # Explicit scoped-VMEM limit (v5e's default is only 16 MiB): estimated
    # double-buffered blocks + f32 temps, with headroom, never below 32 MiB.
    blk_bytes = n_blk * padded_c * l_blk * itemsize
    f32_tmp = n_blk * padded_c32 * l_blk * 4
    small_tmp = 2 * n_blk * 8 * l_blk * 4
    vmem_limit = int(max(32 * _MIB, 4 * blk_bytes + f32_tmp + small_tmp + 4 * _MIB))

    return pl.pallas_call(
        _attention_kernel,
        out_shape=jax.ShapeDtypeStruct((B, C, L), x.dtype),
        grid=grid,
        in_specs=[
            pl.BlockSpec((n_blk, C, l_blk), lambda i, j: (i, 0, j)),
            pl.BlockSpec((C, 1), lambda i, j: (0, 0)),
            pl.BlockSpec(memory_space=pltpu.MemorySpace.SMEM),
        ],
        out_specs=pl.BlockSpec((n_blk, C, l_blk), lambda i, j: (i, 0, j)),
        compiler_params=pltpu.CompilerParams(
            dimension_semantics=("parallel", "parallel"),
            vmem_limit_bytes=vmem_limit),
    )(x, w_col, b_sc)


# ---------------- pure-JAX reference (mirrors the PyTorch code) ----------------
def _ref_attention(x, w, b, trans_me=True):
    xt = jnp.transpose(x, (0, 2, 1)) if trans_me else x          # (B, L, C)
    logits = jnp.einsum("blc,oc->blo", xt, jnp.reshape(w, (1, -1))) + jnp.reshape(b, (-1,))
    weights = jax.nn.softmax(logits, axis=2)                      # (B, L, 1)
    weights = jnp.tile(weights[:, :, 0][:, None, :], (1, xt.shape[2], 1))   # (B, C, L)
    return weights * (jnp.transpose(xt, (0, 2, 1)) if trans_me else xt)


if __name__ == "__main__":
    key = jax.random.PRNGKey(0)

    # Small test: batch=2, in_features=4, seq_len=16 (NCL layout like PyTorch).
    B, C, L = 2, 4, 16
    kx, kw, kb = jax.random.split(key, 3)
    x = jax.random.normal(kx, (B, C, L), jnp.float32)
    bound = 1.0 / math.sqrt(C)
    w = jax.random.uniform(kw, (1, C), jnp.float32, -bound, bound)   # Linear.weight
    b = jax.random.uniform(kb, (1,), jnp.float32, -bound, bound)     # Linear.bias

    out = jax.block_until_ready(attention_forward(x, w, b))
    ref = _ref_attention(x, w, b)
    assert out.shape == (B, C, L), out.shape
    assert jnp.allclose(out, ref, atol=1e-5, rtol=1e-5), \
        float(jnp.max(jnp.abs(out - ref)))

    # Larger lane-dense shape: full-L blocks, batch split across grid steps.
    B2, C2, L2 = 4, 8, 2048
    x2 = jax.random.normal(jax.random.fold_in(key, 1), (B2, C2, L2), jnp.float32)
    w2 = jax.random.uniform(jax.random.fold_in(key, 2), (1, C2), jnp.float32, -0.5, 0.5)
    b2 = jax.random.uniform(jax.random.fold_in(key, 3), (1,), jnp.float32, -0.5, 0.5)
    out2 = jax.block_until_ready(attention_forward(x2, w2, b2))
    ref2 = _ref_attention(x2, w2, b2)
    assert jnp.allclose(out2, ref2, atol=1e-5, rtol=1e-5), \
        float(jnp.max(jnp.abs(out2 - ref2)))

    # Ragged-L tiling path: L not a multiple of 128, small footprint forces
    # 128-multiple blocks with a masked last block.
    B3, C3, L3 = 3, 8, 1000
    x3 = jax.random.normal(jax.random.fold_in(key, 4), (B3, C3, L3), jnp.float32)
    w3 = jax.random.uniform(jax.random.fold_in(key, 5), (1, C3), jnp.float32, -0.5, 0.5)
    b3 = jax.random.uniform(jax.random.fold_in(key, 6), (1,), jnp.float32, -0.5, 0.5)
    out3 = jax.block_until_ready(
        attention_forward(x3, w3, b3, footprint_bytes=64 * 1024))
    ref3 = _ref_attention(x3, w3, b3)
    assert jnp.allclose(out3, ref3, atol=1e-5, rtol=1e-5), \
        float(jnp.max(jnp.abs(out3 - ref3)))

    print("KERNEL_OK")
</pallas_src>

<mosaic_0001>
module attributes {stable_mosaic.version = 11 : i64} {
  func.func @_attention_kernel(%arg0: i32, %arg1: i32, %arg2: memref<1x4x16xf32, #tpu.memory_space<vmem>>, %arg3: memref<4x1xf32, #tpu.memory_space<vmem>>, %arg4: memref<1x1xf32, #tpu.memory_space<smem>>, %arg5: memref<1x4x16xf32, #tpu.memory_space<vmem>>) attributes {dimension_semantics = [#tpu.dimension_semantics<parallel>, #tpu.dimension_semantics<parallel>], iteration_bounds = array<i64: 2, 1>, scalar_prefetch = 0 : i64, scratch_operands = 0 : i64, tpu.core_type = #tpu.core_type<tc>, window_params = [{transform_indices = @transform_0, window_bounds = array<i64: 1, 4, 16>}, {pipeline_mode = #tpu.pipeline_mode<synchronous>, transform_indices = @transform_1, window_bounds = array<i64: 4, 1>}, {transform_indices = @transform_2, window_bounds = array<i64: 1, 1>}, {transform_indices = @transform_3, window_bounds = array<i64: 1, 4, 16>}]} {
    %c0 = arith.constant 0 : index
    %c0_0 = arith.constant 0 : index
    %c0_1 = arith.constant 0 : index
    %0 = vector.load %arg2[%c0, %c0_0, %c0_1] : memref<1x4x16xf32, #tpu.memory_space<vmem>>, vector<1x4x16xf32>
    %c0_2 = arith.constant 0 : index
    %c0_3 = arith.constant 0 : index
    %1 = vector.load %arg3[%c0_2, %c0_3] : memref<4x1xf32, #tpu.memory_space<vmem>>, vector<4x1xf32>
    %2 = vector.shape_cast %1 : vector<4x1xf32> to vector<1x4x1xf32>
    %3 = vector.broadcast %2 : vector<1x4x1xf32> to vector<1x4x16xf32>
    %4 = arith.mulf %0, %3 : vector<1x4x16xf32>
    %cst = arith.constant dense<0.000000e+00> : vector<1x16xf32>
    %5 = vector.multi_reduction <add>, %4, %cst [1] : vector<1x4x16xf32> to vector<1x16xf32>
    %6 = vector.shape_cast %5 : vector<1x16xf32> to vector<1x1x16xf32>
    %c0_4 = arith.constant 0 : index
    %c0_5 = arith.constant 0 : index
    %7 = memref.load %arg4[%c0_4, %c0_5] : memref<1x1xf32, #tpu.memory_space<smem>>
    %8 = vector.broadcast %7 : f32 to vector<1x1x16xf32>
    %9 = arith.addf %6, %8 : vector<1x1x16xf32>
    %10 = arith.subf %9, %9 : vector<1x1x16xf32>
    %cst_6 = arith.constant 1.000000e+00 : f32
    %11 = vector.broadcast %cst_6 : f32 to vector<1x1x16xf32>
    %12 = arith.addf %10, %11 : vector<1x1x16xf32>
    %13 = vector.broadcast %12 : vector<1x1x16xf32> to vector<1x4x16xf32>
    %14 = arith.mulf %13, %0 : vector<1x4x16xf32>
    %c0_7 = arith.constant 0 : index
    %c0_8 = arith.constant 0 : index
    %c0_9 = arith.constant 0 : index
    %15 = vector.load %arg5[%c0_7, %c0_8, %c0_9] : memref<1x4x16xf32, #tpu.memory_space<vmem>>, vector<1x4x16xf32>
    tpu.vector_store %arg5[%c0_7, %c0_8, %c0_9], %14 {strides = array<i32>} : memref<1x4x16xf32, #tpu.memory_space<vmem>>, vector<1x4x16xf32>,
    return
  }
  func.func @transform_0(%arg0: i32, %arg1: i32) -> (i32, i32, i32) {
    %c0_i32 = arith.constant 0 : i32
    %c0_i32_0 = arith.constant 0 : i32
    return %arg0, %c0_i32, %arg1 : i32, i32, i32
  }
  func.func @transform_1(%arg0: i32, %arg1: i32) -> (i32, i32) {
    %c0_i32 = arith.constant 0 : i32
    %c0_i32_0 = arith.constant 0 : i32
    %c0_i32_1 = arith.constant 0 : i32
    return %c0_i32, %c0_i32_0 : i32, i32
  }
  func.func @transform_2(%arg0: i32, %arg1: i32) -> (i32, i32) {
    %c0_i32 = arith.constant 0 : i32
    %c0_i32_0 = arith.constant 0 : i32
    %c0_i32_1 = arith.constant 0 : i32
    return %c0_i32, %c0_i32_0 : i32, i32
  }
  func.func @transform_3(%arg0: i32, %arg1: i32) -> (i32, i32, i32) {
    %c0_i32 = arith.constant 0 : i32
    %c0_i32_0 = arith.constant 0 : i32
    return %arg0, %c0_i32, %arg1 : i32, i32, i32
  }
}

</mosaic_0001>

<bundles_post_ra>
// kernel: tpu_custom_call.1
= control target key start
LH: loop header
LB: loop body
LE: loop exit
PB: predicated region body
PF: predicated region fallthrough
CT: control target
= control target key end

     0   :  { %s591_s0 = inlined_call_operand.vmem [shape: f32[2,4,16], index: 0, kind: input, shape index: {}]   ;;  %s592_s1 = inlined_call_operand.vmem [shape: f32[4,1], index: 1, kind: input, shape index: {}]   ;;  %s593_s2 = inlined_call_operand.<no memory space> [shape: f32[1,1], index: 2, kind: input, shape index: {}]   ;;  %s594_s3 = inlined_call_operand.hbm [shape: f32[2,4,16], index: 3, kind: output, shape index: {}]  }
   0x1   :  { %8 = sst [smem:[#allocation2]] %s593_s2 }
   0x2   :  { %9 = vsyncpa [#allocation4], 0 }
   0x3   :  { %11 = vsyncpa [#allocation4 + $0x1], 0  ;;  %s474_s14 = smov 0   ;;  %s476_s15 = smov 0  }
   0x4   :  { %s478_s16 = smov 0   ;;  %s480_s17 = smov 0  }
   0x5   :  { %s482_s18 = smov 0   ;;  %s484_s19 = smov 0  }
   0x6 LB: > { %s301_s2 = sadd.s32 4294967295, %s447_s19   ;;  %s302_s20 = sadd.s32 4294967294, %s447_s19   ;;  %s447_s19 = sphi %s484_s19, %s17_s19   ;;  %s443_s18 = sphi %s482_s18, %s601_s18   ;;  %s439_s17 = sphi %s480_s17, %s600_s17   ;;  %s435_s16 = sphi %s478_s16, %s599_s16   ;;  %s431_s15 = sphi %s476_s15, %s598_s15   ;;  %s427_s14 = sphi %s474_s14, %s597_s14  }
   0x7   : > { %s29_s21 = sadd.s32 1, %s443_s18  ;;  %s108_s22 = sadd.s32 1, %s435_s16 }
   0x8   : > { %p31_p0 = scmp.ge.s32.totalorder %s29_s21, 2  ;;  %p118_p1 = scmp.ne.s32.totalorder %s435_s16, %s431_s15 }
   0x9   : > { %p119_p2 = scmp.eq.s32.totalorder %s301_s2, 1  ;;  %p124_p3 = scmp.ne.s32.totalorder %s431_s15, %s427_s14 }
   0xa   : > { %s603_s21 = smov (%p31_p0, %s29_s21), 0  ;;  %p125_p5 = scmp.eq.s32.totalorder %s302_s20, 1 }
   0xb   : > { %p514_p4 = por %p119_p2, %p118_p1  ;;  %s103_s24 = ssub.s32 %s443_s18, %s603_s21 }
   0xc   : > { %p305_p6 = scmp.ge.s32.totalorder %s447_s19, 1  ;;  %p106_p7 = scmp.eq.s32.totalorder %s103_s24, 0 }
   0xd   : > { %p521_p8 = por %p125_p5, %p124_p3  ;;  %p159_p9 = scmp.lt.s32.totalorder %s447_s19, 3 }
   0xe   : > { %s527_s26 = scalar_select %p106_p7, %s435_s16, %s108_s22  }
   0xf   : > { %p160_p10 = pnand %p305_p6, %p159_p9 }
  0x10   : > { %v193_v0 = vld [vmem:[%s592_s1] sm:$0xf] (!%p160_p10)  ;;  %v449_v1 = vmov (!%p160_p10), 0   ;;  %p185_p11 = scmp.lt.s32.totalorder (!%p160_p10), %s439_s17, 1  ;;  %vm200_vm0 = vcmask (!%p160_p10), 125952   ;;  %s208_s7 = sld [smem:[#allocation2]] (!%p160_p10) }
  0x11   : > { %163 = sbr.rel (%p160_p10) target bundleno = 183 (0xb7), region = 32  ;;  %368 = vset.pattern.permute.xlu0 (!%p160_p10), %v449_v1  ;;  %s182_s8 = sand.u32 (!%p160_p10), 1, %s431_s15  }
  0x12   : > { %196 = vperm.xlu0 (!%p160_p10), %368, %v193_v0   ;;  %s306_s9 = sshll.u32 (!%p160_p10), %s182_s8, 2  ;;  %s309_s10 = sshll.u32 (!%p160_p10), %s439_s17, 6 }
  0x13   : > { %s184_s11 = scalar_lea.vmem (!%p160_p10), [#allocation3], %s306_s9  ;;  %s543_s20 = scalar_lea.hbm (!%p160_p10), %s594_s3, %s309_s10 }
  0x14   : > { %s230_s12 = sshll.u32 (!%p160_p10), %s184_s11, 4  ;;  %s216_s22 = scalar_lea.sflag (!%p160_p10), [#allocation4], %s182_s8  ;;  %s545_s12 = int_to_ptr.vmem [resolvable:$true] %s230_s12 }
  0x15   : > { %s369_s24 = scalar_lea.vmem (!%p160_p10), %s545_s12, 64 }
  0x16   : > { %v209_v11 = vstv (!%p160_p10), %s208_s7  ;;  %p370_p12 = scmp.ne.s32.totalorder (!%p160_p10), %s545_s12, %s369_s24 }
  0x18   : > { %s186_s29 = scalar_select %p185_p11, %s439_s17, 1 }
  0x19   : > { %p371_p13 = pnand %p370_p12, %p514_p4  ;;  %s450_s17 = smov [#allocation3]  }
  0x1a   : > { %s307_s30 = sshll.u32 %s186_s29, 2  ;;  %s373_s27 = sshll.u32 %s450_s17, 4  ;;  %s374_s27 = int_to_ptr.vmem [resolvable:$false] %s373_s27 }
  0x1b   : > { %s191_s6 = scalar_lea.vmem %s591_s0, %s307_s30  ;;  %p372_p0 = pneg %p371_p13 }
  0x1c   : > { %v192_v2 = vld [vmem:[%s191_s6] sm:$0xf]  ;;  %s375_s28 = scalar_lea.vmem %s374_s27, 128  ;;  %p376_p1 = scmp.lt.s32.totalorder %s545_s12, %s374_s27 }
  0x1d   : > { %p377_p2 = scmp.lt.s32.totalorder %s375_s28, %s369_s24 }
  0x1f   : > { %p378_p3 = por %p377_p2, %p376_p1 }
  0x21   : > { %p379_p5 = pnand %p378_p3, %p372_p0 }
  0x91   : > { %v197_v3 = vpop.permute.xlu0 %196 }
  0x92   : > { %v199_v4 = vmul.f32 %v197_v3, %v192_v2 }
  0x94   : > { %v201_v5 = vsel %vm200_vm0, %v199_v4, 0.0 }
  0x95   : > { %v202_v6 = vrot.slane %v201_v5, 4 }
  0x97   : > { %v203_v7 = vadd.f32 %v202_v6, %v201_v5 }
  0x99   : > { %v204_v8 = vrot.slane %v203_v7, 2 }
  0x9b   : > { %v205_v9 = vadd.f32 %v204_v8, %v203_v7 }
  0x9d   : > { %v206_v10 = vrot.slane %v205_v9, 1 }
  0x9f   : > { %v207_v12 = vadd.f32 %v206_v10, %v205_v9 }
  0xa1   : > { %v210_v13 = vadd.f32 %v209_v11, %v207_v12 }
  0xa3   : > { %v211_v14 = vsub.f32 %v210_v13, %v210_v13 }
  0xa5   : > { %v212_v15 = vadd.f32 1.0, %v211_v14 }
  0xa7   : > { %v213_v16 = vmul.f32 %v212_v15, %v192_v2 }
  0xa9   : > { %214 = vst.msk [vmem:[%s184_s11] sm:$0xf] %vm200_vm0, %v213_v16 }
  0xaa   : > { %382 = shalt.err (!%p379_p5)
}
  0xab   : > { %s383_s29 = scalar_lea.hbm %s543_s20, 64  ;;  %s387_s5 = scalar_lea.hbm %s594_s3, 128 }
  0xac   : > { %p384_p6 = scmp.ne.s32.totalorder %s543_s20, %s383_s29  ;;  %p388_p10 = scmp.lt.u32.totalorder %s543_s20, %s594_s3 }
  0xad   : > { %p389_p11 = scmp.lt.u32.totalorder %s387_s5, %s383_s29  ;;  %p391_p13 = scmp.lt.u32.totalorder %s383_s29, %s543_s20 }
  0xae   : > { %p385_p7 = pnand %p384_p6, %p514_p4 }
  0xaf   : > { %p390_p12 = por %p389_p11, %p388_p10 }
  0xb0   : > { %p386_p9 = pneg %p385_p7 }
  0xb1   : > { %p392_p0 = por %p391_p13, %p390_p12 }
  0xb3   : > { %p393_p1 = pnand %p392_p0, %p386_p9 }
  0xb5   : > { %396 = shalt.err (!%p393_p1)
}
  0xb6   : > { %312 = dma.vmem_to_hbm [thread:$0]  (%p514_p4), %s545_s12, 64, %s543_s20, %s216_s22  }
  0xb7 PF: > { %p318_p2 = scmp.ge.s32.totalorder %s447_s19, 2  ;;  %s242_s8 = sand.u32 1, %s427_s14  }
  0xb8   : > { %s243_s9 = scalar_lea.sflag [#allocation4], %s242_s8 }
  0xb9   : > { %p315_p3 = pnand %p318_p2, %p521_p8 }
  0xbb   : > { %422 = dma.done.wait (!%p315_p3), %s243_s9, 64  }
  0xbc   : > { %424 = vsyncadd (!%p315_p3), %s243_s9, 4294967232  ;;  %s17_s19 = sadd.s32 1, %s447_s19   ;;  %s597_s14 = smov %s431_s15 }
  0xbd   : > { %p14_p5 = scmp.ge.s32.totalorder %s17_s19, 4   ;;  %s598_s15 = smov %s435_s16 }
  0xbe   : > { %s599_s16 = smov %s527_s26  ;;  %s600_s17 = smov %s443_s18 }
  0xbf   : > { %s601_s18 = smov %s603_s21  ;;  %16 = sbr.rel (!%p14_p5) target bundleno = 6 (0x6), region = 67 }
  0xc6   :  { %248 = vsyncpa [#allocation4], 1 }
  0xc7   :  { %250 = vsyncpa [#allocation4 + $0x1], 1 }

</bundles_post_ra>
